<compile_context>
chip_gen: v6e
topology: v6e:2x2x1
jax: 0.10.0
libtpu: 0.0.40
codegen_flags: <defaults>
</compile_context>

<pallas_src>
import jax
import jax.numpy as jnp
import numpy as np
from jax.experimental import pallas as pl
from jax.experimental.pallas import tpu as pltpu


def _round_up(x, m):
    return ((x + m - 1) // m) * m


def _lora_kernel(x_ref, wa_ref, wb_ref, o_ref, xa_ref):
    """One (tm, tn) output tile: o = (x @ W_a) @ (alpha * W_b)."""
    # x @ W_a does not depend on the out_dim tile index j: compute it once per
    # row tile (j is the innermost "arbitrary" axis) and cache it in VMEM.
    @pl.when(pl.program_id(1) == 0)
    def _():
        xa_ref[...] = jnp.dot(x_ref[...], wa_ref[...],
                              preferred_element_type=jnp.float32)

    # Second matmul stays on the MXU: even at K=rank it hides under the output
    # DMA in this HBM-bound kernel and leaves VALU / vst / XLU slots free.
    o_ref[...] = jnp.dot(xa_ref[...], wb_ref[...],
                         preferred_element_type=jnp.float32).astype(o_ref.dtype)


def _vmem_budget_bytes():
    # ~3/4 of per-core physical VMEM: ~48 MiB on v7x (64 MiB/TC), ~96 MiB on
    # v5e/v6e (128 MiB).  Fall back to the v7x-safe value if the query fails.
    cap = 64 * 1024 * 1024
    try:
        cap = int(getattr(pltpu.get_tpu_info(), "vmem_capacity_bytes", cap))
    except Exception:
        pass
    return (3 * cap) // 4


def lora_forward(x, w_a, w_b, alpha, *, tile_m=512, max_tile_n=None,
                 out_dtype=None):
    """LoRALayer.forward: out = alpha * (x @ W_a @ W_b);  x: (..., in_dim)."""
    *lead, in_dim = x.shape
    rank, out_dim = w_b.shape
    assert w_a.shape == (in_dim, rank)

    out_dtype = x.dtype if out_dtype is None else jnp.dtype(out_dtype)

    # Fold alpha into the tiny (rank, out_dim) W_b once; removes a per-step
    # (tm, tn) VPU multiply from the kernel.
    w_b = w_b * jnp.asarray(alpha, dtype=w_b.dtype)

    M = int(np.prod(lead)) if lead else 1
    x2 = x.reshape(M, in_dim)

    x_item = jnp.dtype(x2.dtype).itemsize
    wa_item = jnp.dtype(w_a.dtype).itemsize
    wb_item = jnp.dtype(w_b.dtype).itemsize
    o_item = jnp.dtype(out_dtype).itemsize

    # Row tile: big (amortizes ~0.35us/step), aligned to the dtype's sublane
    # packing, clamped to the problem size.
    row_align = 8 if x_item >= 4 else (16 if x_item == 2 else 32)
    tm = max(row_align,
             min(_round_up(tile_m, row_align), _round_up(M, row_align)))

    budget = _vmem_budget_bytes()

    def footprint(tm_, tn_):
        # Double-buffered I/O tiles + xa scratch (lane-padded) + the in-kernel
        # f32 (tm, tn) dot result before the output cast.
        dbuf = 2 * (x_item * tm_ * in_dim
                    + wa_item * in_dim * rank
                    + wb_item * rank * tn_
                    + o_item * tm_ * tn_)
        xa_scratch = 4 * tm_ * max(128, _round_up(rank, 128))
        f32_temp = 4 * tm_ * tn_
        return dbuf + xa_scratch + f32_temp

    # Prefer the full out_dim as one lane-dense tile (grid_j == 1): fewest grid
    # steps and zero redundant work.  Shrink tm (not below 256) first, then
    # split out_dim into multiples of 128, then shrink tm further if needed.
    tn = out_dim
    while footprint(tm, tn) > budget and tm > max(row_align, 256):
        tm = max(row_align, _round_up(tm // 2, row_align))
    if footprint(tm, tn) > budget and out_dim > 128:
        tn = _round_up(out_dim, 128)
        while footprint(tm, tn) > budget and tn > 128:
            tn = max(128, _round_up(tn // 2, 128))
    while footprint(tm, tn) > budget and tm > row_align:
        tm = max(row_align, _round_up(tm // 2, row_align))
    if max_tile_n is not None and out_dim > 128:
        tn = min(tn, max(128, _round_up(int(max_tile_n), 128)))

    grid = (pl.cdiv(M, tm), pl.cdiv(out_dim, tn))

    out2 = pl.pallas_call(
        _lora_kernel,
        out_shape=jax.ShapeDtypeStruct((M, out_dim), out_dtype),
        grid_spec=pltpu.PrefetchScalarGridSpec(
            num_scalar_prefetch=0,
            grid=grid,
            in_specs=[
                # Row tile of activations: constant across the j sweep, so the
                # pipeline does not re-DMA it while j varies (j is innermost).
                pl.BlockSpec((tm, in_dim), lambda i, j: (i, 0)),
                # W_a is tiny: keep the full matrix resident.
                pl.BlockSpec((in_dim, rank), lambda i, j: (0, 0)),
                # alpha*W_b blocked along the output dimension.
                pl.BlockSpec((rank, tn), lambda i, j: (0, j)),
            ],
            out_specs=pl.BlockSpec((tm, tn), lambda i, j: (i, j)),
            scratch_shapes=[pltpu.VMEM((tm, rank), jnp.float32)],
        ),
        compiler_params=pltpu.CompilerParams(
            # Shard the row axis across TensorCores (v7x megacore); the out_dim
            # axis must stay "arbitrary" so the cached xa is reused across j.
            dimension_semantics=("parallel", "arbitrary"),
            vmem_limit_bytes=int(budget),
        ),
    )(x2, w_a, w_b)

    return out2.reshape(*lead, out_dim)


def init_lora_params(key, in_dim, out_dim, rank):
    # Matches LoRALayer.__init__:
    #   W_a = randn(in_dim, rank) * 1/sqrt(rank);  W_b = zeros(rank, out_dim)
    std_dev = 1.0 / float(np.sqrt(rank))
    w_a = jax.random.normal(key, (in_dim, rank), dtype=jnp.float32) * std_dev
    w_b = jnp.zeros((rank, out_dim), dtype=jnp.float32)
    return w_a, w_b


def _check(out, x, w_a, w_b, alpha, tol=2e-2):
    # High-precision host reference; default MXU precision may run f32 matmuls
    # as bf16 passes, so compare with a normalized tolerance.
    x64 = np.asarray(x, np.float64).reshape(-1, x.shape[-1])
    ref = alpha * (x64 @ np.asarray(w_a, np.float64) @ np.asarray(w_b, np.float64))
    got = np.asarray(out, np.float64).reshape(ref.shape)
    err = np.max(np.abs(got - ref))
    scale = np.max(np.abs(ref)) + 1e-12
    assert err / scale < tol, f"max normalized error {err / scale:.3e}"


if __name__ == "__main__":
    key = jax.random.PRNGKey(0)
    (k_x, k_wa, k_wb,
     k_x2, k_wa2, k_wb2,
     k_x3, k_wa3, k_wb3) = jax.random.split(key, 9)

    # Config 1: small shapes consistent with the module (batch=2, seq=8, hidden=32).
    batch, seq, in_dim, out_dim, rank, alpha = 2, 8, 32, 32, 4, 2.0
    x = jax.random.normal(k_x, (batch, seq, in_dim), dtype=jnp.float32)
    std_dev = 1.0 / float(np.sqrt(rank))
    w_a = jax.random.normal(k_wa, (in_dim, rank), dtype=jnp.float32) * std_dev
    # The real module initializes W_b to zeros (output identically 0); use a
    # random W_b here so the check exercises both matmuls.
    w_b = jax.random.normal(k_wb, (rank, out_dim), dtype=jnp.float32)
    out = jax.block_until_ready(lora_forward(x, w_a, w_b, alpha))
    assert out.shape == (batch, seq, out_dim)
    _check(out, x, w_a, w_b, alpha)

    # Config 2: ragged row count (M=24) and out_dim=160 kept as one full-dim tile.
    x2 = jax.random.normal(k_x2, (1, 24, 64), dtype=jnp.float32)
    w_a2 = jax.random.normal(k_wa2, (64, 16), dtype=jnp.float32) * 0.25
    w_b2 = jax.random.normal(k_wb2, (16, 160), dtype=jnp.float32)
    out2 = jax.block_until_ready(lora_forward(x2, w_a2, w_b2, 0.5))
    assert out2.shape == (1, 24, 160)
    _check(out2, x2, w_a2, w_b2, 0.5)

    # Config 3: force an out_dim split (grid_j > 1) plus partial boundary blocks
    # on both axes -> exercises the xa scratch reuse across j and masked stores.
    x3 = jax.random.normal(k_x3, (5, 8, 48), dtype=jnp.float32)   # M = 40
    w_a3 = jax.random.normal(k_wa3, (48, 4), dtype=jnp.float32) * 0.5
    w_b3 = jax.random.normal(k_wb3, (4, 200), dtype=jnp.float32)
    out3 = jax.block_until_ready(
        lora_forward(x3, w_a3, w_b3, 1.5, tile_m=32, max_tile_n=128))
    assert out3.shape == (5, 8, 200)
    _check(out3, x3, w_a3, w_b3, 1.5)

    print("KERNEL_OK")
</pallas_src>

<mosaic_0001>
module attributes {stable_mosaic.version = 11 : i64} {
  func.func @_lora_kernel(%arg0: i32, %arg1: i32, %arg2: memref<16x32xf32, #tpu.memory_space<vmem>>, %arg3: memref<32x4xf32, #tpu.memory_space<vmem>>, %arg4: memref<4x32xf32, #tpu.memory_space<vmem>>, %arg5: memref<16x32xf32, #tpu.memory_space<vmem>>, %arg6: memref<16x4xf32, #tpu.memory_space<vmem>>) attributes {dimension_semantics = [#tpu.dimension_semantics<parallel>, #tpu.dimension_semantics<arbitrary>], iteration_bounds = array<i64: 1, 1>, scalar_prefetch = 0 : i64, scratch_operands = 1 : i64, tpu.core_type = #tpu.core_type<tc>, window_params = [{transform_indices = @transform_0, window_bounds = array<i64: 16, 32>}, {pipeline_mode = #tpu.pipeline_mode<synchronous>, transform_indices = @transform_1, window_bounds = array<i64: 32, 4>}, {transform_indices = @transform_2, window_bounds = array<i64: 4, 32>}, {transform_indices = @transform_3, window_bounds = array<i64: 16, 32>}]} {
    %c0_i32 = arith.constant 0 : i32
    %0 = arith.cmpi eq, %arg1, %c0_i32 : i32
    %1 = arith.extui %0 : i1 to i32
    %c0_i32_0 = arith.constant 0 : i32
    %2 = arith.cmpi ne, %1, %c0_i32_0 : i32
    scf.if %2 {
      %c0_6 = arith.constant 0 : index
      %c0_7 = arith.constant 0 : index
      %7 = vector.load %arg2[%c0_6, %c0_7] : memref<16x32xf32, #tpu.memory_space<vmem>>, vector<16x32xf32>
      %c0_8 = arith.constant 0 : index
      %c0_9 = arith.constant 0 : index
      %8 = vector.load %arg3[%c0_8, %c0_9] : memref<32x4xf32, #tpu.memory_space<vmem>>, vector<32x4xf32>
      %cst_10 = arith.constant dense<0.000000e+00> : vector<16x4xf32>
      %9 = tpu.matmul %7, %8, %cst_10 {dimension_numbers = #tpu.dot_dimension_numbers<[1], [0], [0], [1], [0, 0, 1, 1], [], []>} : vector<16x32xf32>, vector<32x4xf32>, vector<16x4xf32> -> vector<16x4xf32>
      %c0_11 = arith.constant 0 : index
      %c0_12 = arith.constant 0 : index
      %10 = vector.load %arg6[%c0_11, %c0_12] : memref<16x4xf32, #tpu.memory_space<vmem>>, vector<16x4xf32>
      tpu.vector_store %arg6[%c0_11, %c0_12], %9 {strides = array<i32>} : memref<16x4xf32, #tpu.memory_space<vmem>>, vector<16x4xf32>,
    } else {
    }
    %c0 = arith.constant 0 : index
    %c0_1 = arith.constant 0 : index
    %3 = vector.load %arg6[%c0, %c0_1] : memref<16x4xf32, #tpu.memory_space<vmem>>, vector<16x4xf32>
    %c0_2 = arith.constant 0 : index
    %c0_3 = arith.constant 0 : index
    %4 = vector.load %arg4[%c0_2, %c0_3] : memref<4x32xf32, #tpu.memory_space<vmem>>, vector<4x32xf32>
    %cst = arith.constant dense<0.000000e+00> : vector<16x32xf32>
    %5 = tpu.matmul %3, %4, %cst {dimension_numbers = #tpu.dot_dimension_numbers<[1], [0], [0], [1], [0, 0, 1, 1], [], []>} : vector<16x4xf32>, vector<4x32xf32>, vector<16x32xf32> -> vector<16x32xf32>
    %c0_4 = arith.constant 0 : index
    %c0_5 = arith.constant 0 : index
    %6 = vector.load %arg5[%c0_4, %c0_5] : memref<16x32xf32, #tpu.memory_space<vmem>>, vector<16x32xf32>
    tpu.vector_store %arg5[%c0_4, %c0_5], %5 {strides = array<i32>} : memref<16x32xf32, #tpu.memory_space<vmem>>, vector<16x32xf32>,
    return
  }
  func.func @transform_0(%arg0: i32, %arg1: i32) -> (i32, i32) {
    %c0_i32 = arith.constant 0 : i32
    %c0_i32_0 = arith.constant 0 : i32
    return %arg0, %c0_i32 : i32, i32
  }
  func.func @transform_1(%arg0: i32, %arg1: i32) -> (i32, i32) {
    %c0_i32 = arith.constant 0 : i32
    %c0_i32_0 = arith.constant 0 : i32
    %c0_i32_1 = arith.constant 0 : i32
    return %c0_i32, %c0_i32_0 : i32, i32
  }
  func.func @transform_2(%arg0: i32, %arg1: i32) -> (i32, i32) {
    %c0_i32 = arith.constant 0 : i32
    %c0_i32_0 = arith.constant 0 : i32
    return %c0_i32, %arg1 : i32, i32
  }
  func.func @transform_3(%arg0: i32, %arg1: i32) -> (i32, i32) {
    %c0_i32 = arith.constant 0 : i32
    return %arg0, %arg1 : i32, i32
  }
}

</mosaic_0001>

<bundles_post_ra>
// kernel: tpu_custom_call.1
= control target key start
LH: loop header
LB: loop body
LE: loop exit
PB: predicated region body
PF: predicated region fallthrough
CT: control target
= control target key end

     0   :  { %vm25_vm0 = vcmask 261120   ;;  %s324_s0 = inlined_call_operand.vmem [shape: f32[16,32], index: 0, kind: input, shape index: {}]   ;;  %s325_s1 = inlined_call_operand.vmem [shape: f32[32,4], index: 1, kind: input, shape index: {}]   ;;  %s326_s2 = inlined_call_operand.vmem [shape: f32[4,32], index: 2, kind: input, shape index: {}]   ;;  %s327_s3 = inlined_call_operand.hbm [shape: f32[16,32], index: 3, kind: output, shape index: {}]  }
   0x1   :  { %v24_v0 = vld [vmem:[%s325_s1 + $0x18] sm:$0xff]  ;;  %v23_v1 = vld [vmem:[%s325_s1 + $0x10] sm:$0xff]  ;;  %v19_v2 = vld [vmem:[%s324_s0] sm:$0xff] }
   0x2   :  { %232 = vmatprep.subr.mxu0 %v24_v0  ;;  %v22_v3 = vld [vmem:[%s325_s1 + $0x8] sm:$0xff]  ;;  %240 = vmatprep.mubr.msk.f32.mxu0 %vm25_vm0, %v19_v2 }
   0x3   :  { %233 = vmatpush3.msra.mxu0 %v24_v0 }
   0x4   :  { %8 = vsyncpa [#allocation4], 0  ;;  %234 = vmatprep.subr.mxu0 %v23_v1  ;;  %v21_v4 = vld [vmem:[%s325_s1] sm:$0xff]  ;;  %v20_v5 = vld [vmem:[%s324_s0 + $0x8] sm:$0xff]  ;;  %vm120_vm1 = vcmask 1043456   ;;  %vm107_vm2 = vcmask 31744  }
   0x5   :  { %235 = vmatpush3.msra.mxu0 %v23_v1  ;;  %v112_v6 = vld [vmem:[%s326_s2] sm:$0xf]  ;;  %s273_s0 = smov [#allocation3]  }
   0x6   :  { %236 = vmatprep.subr.mxu0 %v22_v3  ;;  %243 = vmatprep.subr.msk.mxu1 %vm120_vm1, %v112_v6  ;;  %s207_s1 = sshll.u32 %s273_s0, 4  ;;  %s208_s1 = int_to_ptr.vmem [resolvable:$true] %s207_s1 }
   0x7   :  { %237 = vmatpush3.msra.mxu0 %v22_v3  ;;  %244 = vmatpush3.msk.msra.mxu1 %vm120_vm1, %v112_v6  ;;  %s251_s2 = scalar_lea.vmem %s208_s1, 256  ;;  %p256_p1 = scmp.lt.s32.totalorder %s208_s1, %s208_s1 }
   0x8   :  { %238 = vmatprep.subr.mxu0 %v21_v4  ;;  %p252_p0 = scmp.ne.s32.totalorder %s208_s1, %s251_s2  ;;  %p257_p2 = scmp.lt.s32.totalorder %s251_s2, %s251_s2 }
   0x9   :  { %239 = vmatpush3.msra.mxu0 %v21_v4 }
   0xa   :  { %241 = vmatmul.mubr.msk.f32.vlgmr.msra.gmra.mxu0 %vm25_vm0, %v20_v5  ;;  %p258_p3 = por %p257_p2, %p256_p1 }
   0xc   :  { %p259_p4 = pnand %p258_p3, %p252_p0 }
  0xca   :  { %v242_v7 = vpop.f32.mrf.mxu0 }
  0xcb   :  { %109 = vst.msk [vmem:[#allocation2 + $0x8] sm:$0xff] %vm107_vm2, %v242_v7 }
  0xcc   :  { %v98_v8 = vpop.f32.mrf.mxu0 }
  0xcd   :  { %108 = vst.msk [vmem:[#allocation2] sm:$0xff] %vm107_vm2, %v98_v8 }
  0xd2   :  { %v111_v10 = vld [vmem:[#allocation2 + $0x8] sm:$0xff] }
  0xd4   :  { %v110_v9 = vld [vmem:[#allocation2] sm:$0xff] }
  0xd5   :  { %245 = vmatprep.mubr.msk.f32.mxu1 %vm107_vm2, %v110_v9 }
  0xd6   :  { %246 = vmatmul.mubr.msk.f32.vlgmr.msra.gmra.mxu1 %vm107_vm2, %v111_v10 }
 0x196   :  { %v247_v11 = vpop.f32.mrf.mxu1 }
 0x197   :  { %201 = vst.msk [vmem:[#allocation3 + $0x8] sm:$0xff] %vm25_vm0, %v247_v11 }
 0x198   :  { %v190_v12 = vpop.f32.mrf.mxu1 }
 0x199   :  { %200 = vst.msk [vmem:[#allocation3] sm:$0xff] %vm25_vm0, %v190_v12 }
 0x19a   :  { %262 = shalt.err (!%p259_p4)
}
 0x19b   :  { %s274_s26 = smov 128   ;;  %s275_s27 = smov 8  }
 0x19c   :  { %213 = dma.vmem_to_hbm [thread:$0]  %s208_s1, 256, %s327_s3, [#allocation4], %s274_s26, %s274_s26, %s275_s27  }
 0x19d   :  { %271 = dma.done.wait [#allocation4], 256  }
 0x19e   :  { %272 = vsyncadd [#allocation4], 4294967040 }
 0x19f   :  { %217 = vsyncpa [#allocation4], 1 }

</bundles_post_ra>
